<compile_context>
chip_gen: v7x
topology: tpu7x:2x2x1
jax: 0.10.0
libtpu: 0.0.40
codegen_flags: <defaults>
</compile_context>

<pallas_src>
import jax
import jax.numpy as jnp
from jax.experimental import pallas as pl
from jax.experimental.pallas import tpu as pltpu


def _decoder_kernel(u_ref, m_ref, o_ref):
    # u_ref, m_ref: (D, TE) tiles — D on sublanes, TE edges on lanes.
    # o_ref:        (1, TE) lane-dense per-edge score row.
    prod = u_ref[...].astype(jnp.float32) * m_ref[...].astype(jnp.float32)
    o_ref[...] = jnp.sum(prod, axis=0, keepdims=True)   # sublane reduce -> (1, TE)


def decoder_forward(user_z, movie_z, edge_label_index, *, te=512):
    """user_z: (Nu, D), movie_z: (Nm, D), edge_label_index: (2, E) int.

    Returns (E,) dot-product scores, matching the PyTorch Decoder.forward.
    """
    Nu, D = user_z.shape
    Nm, _ = movie_z.shape
    E = edge_label_index.shape[1]

    uidx = edge_label_index[0].astype(jnp.int32)
    midx = edge_label_index[1].astype(jnp.int32)

    # Dense pre-gather in the wrapper (layout plumbing); the hot multiply +
    # reduce runs in the kernel on large lane-dense tiles.
    ug = jnp.take(user_z, uidx, axis=0)      # (E, D)
    mg = jnp.take(movie_z, midx, axis=0)     # (E, D)

    # Edges per grid step: multiple of 128, capped so tiny E doesn't over-pad.
    te = int(min(te, max(128, pl.cdiv(E, 128) * 128)))
    e_pad = pl.cdiv(E, te) * te
    if e_pad != E:
        ug = jnp.pad(ug, ((0, e_pad - E), (0, 0)))
        mg = jnp.pad(mg, ((0, e_pad - E), (0, 0)))

    # Transpose so edges sit on the lane axis: (D, E_pad).
    ug_t = ug.T
    mg_t = mg.T

    n_blocks = e_pad // te

    out = pl.pallas_call(
        _decoder_kernel,
        out_shape=jax.ShapeDtypeStruct((n_blocks, te), jnp.float32),
        grid_spec=pltpu.PrefetchScalarGridSpec(
            num_scalar_prefetch=0,
            grid=(n_blocks,),
            in_specs=[
                pl.BlockSpec((D, te), lambda i: (0, i)),
                pl.BlockSpec((D, te), lambda i: (0, i)),
            ],
            out_specs=pl.BlockSpec((1, te), lambda i: (i, 0)),
        ),
        compiler_params=pltpu.CompilerParams(
            dimension_semantics=("parallel",),        # edges independent -> 2 TCs on v7x
            vmem_limit_bytes=32 * 1024 * 1024,
        ),
    )(ug_t, mg_t)

    return out.reshape(e_pad)[:E].astype(user_z.dtype)


if __name__ == "__main__":
    # Decoder(hidden_channels=8, num_heads=4) -> embedding dim D = 32.
    # (The module itself has no learnable parameters; embeddings are inputs.)
    hidden_channels, num_heads = 8, 4
    D = hidden_channels * num_heads
    num_users, num_movies, num_edges = 16, 12, 8

    key = jax.random.PRNGKey(0)
    k_u, k_m, k_e0, k_e1 = jax.random.split(key, 4)

    user_z = jax.random.normal(k_u, (num_users, D), dtype=jnp.float32)
    movie_z = jax.random.normal(k_m, (num_movies, D), dtype=jnp.float32)
    edge_label_index = jnp.stack([
        jax.random.randint(k_e0, (num_edges,), 0, num_users, dtype=jnp.int32),
        jax.random.randint(k_e1, (num_edges,), 0, num_movies, dtype=jnp.int32),
    ])

    scores = decoder_forward(user_z, movie_z, edge_label_index)
    scores = jax.block_until_ready(scores)

    # Pure-JAX reference for correctness.
    ref = jnp.sum(user_z[edge_label_index[0]] * movie_z[edge_label_index[1]],
                  axis=-1)
    assert scores.shape == (num_edges,)
    assert jnp.allclose(scores, ref, atol=1e-5, rtol=1e-5), (scores, ref)

    print("KERNEL_OK")
</pallas_src>

<mosaic_0001>
module attributes {stable_mosaic.version = 11 : i64} {
  func.func @_decoder_kernel(%arg0: i32, %arg1: memref<32x128xf32, #tpu.memory_space<vmem>>, %arg2: memref<32x128xf32, #tpu.memory_space<vmem>>, %arg3: memref<1x128xf32, #tpu.memory_space<vmem>>) attributes {dimension_semantics = [#tpu.dimension_semantics<parallel>], iteration_bounds = array<i64: 1>, scalar_prefetch = 0 : i64, scratch_operands = 0 : i64, tpu.core_type = #tpu.core_type<tc>, window_params = [{transform_indices = @transform_0, window_bounds = array<i64: 32, 128>}, {transform_indices = @transform_1, window_bounds = array<i64: 32, 128>}, {transform_indices = @transform_2, window_bounds = array<i64: 1, 128>}]} {
    %c0 = arith.constant 0 : index
    %c0_0 = arith.constant 0 : index
    %0 = vector.load %arg1[%c0, %c0_0] : memref<32x128xf32, #tpu.memory_space<vmem>>, vector<32x128xf32>
    %c0_1 = arith.constant 0 : index
    %c0_2 = arith.constant 0 : index
    %1 = vector.load %arg2[%c0_1, %c0_2] : memref<32x128xf32, #tpu.memory_space<vmem>>, vector<32x128xf32>
    %2 = arith.mulf %0, %1 : vector<32x128xf32>
    %cst = arith.constant dense<0.000000e+00> : vector<128xf32>
    %3 = vector.multi_reduction <add>, %2, %cst [0] : vector<32x128xf32> to vector<128xf32>
    %4 = vector.shape_cast %3 : vector<128xf32> to vector<1x128xf32>
    %c0_3 = arith.constant 0 : index
    %c0_4 = arith.constant 0 : index
    %5 = vector.load %arg3[%c0_3, %c0_4] : memref<1x128xf32, #tpu.memory_space<vmem>>, vector<1x128xf32>
    tpu.vector_store %arg3[%c0_3, %c0_4], %4 {strides = array<i32>} : memref<1x128xf32, #tpu.memory_space<vmem>>, vector<1x128xf32>,
    return
  }
  func.func @transform_0(%arg0: i32) -> (i32, i32) {
    %c0_i32 = arith.constant 0 : i32
    %c0_i32_0 = arith.constant 0 : i32
    return %c0_i32, %arg0 : i32, i32
  }
  func.func @transform_1(%arg0: i32) -> (i32, i32) {
    %c0_i32 = arith.constant 0 : i32
    %c0_i32_0 = arith.constant 0 : i32
    return %c0_i32, %arg0 : i32, i32
  }
  func.func @transform_2(%arg0: i32) -> (i32, i32) {
    %c0_i32 = arith.constant 0 : i32
    %c0_i32_0 = arith.constant 0 : i32
    return %arg0, %c0_i32 : i32, i32
  }
}

</mosaic_0001>

<bundles_post_ra>
// kernel: tpu_custom_call.1
= control target key start
LH: loop header
LB: loop body
LE: loop exit
PB: predicated region body
PF: predicated region fallthrough
CT: control target
= control target key end

     0   :  { %7 = vsyncpa [#allocation3], 0  ;;  %s211_s0 = inlined_call_operand.hbm [shape: f32[32,128], index: 0, kind: input, shape index: {}]   ;;  %s212_s1 = inlined_call_operand.hbm [shape: f32[32,128], index: 1, kind: input, shape index: {}]   ;;  %s213_s2 = inlined_call_operand.hbm [shape: f32[1,128], index: 2, kind: output, shape index: {}]  }
   0x1   :  { %8 = vsyncpa [#allocation6], 0 }
   0x2   :  { %9 = vsyncpa [#allocation4], 0  ;;  %s155_s9 = smov [#allocation2]   ;;  %s83_s13 = scalar_lea.hbm %s211_s0, 512 }
   0x3   :  { %s15_s10 = sshll.u32 %s155_s9, 4  ;;  %p84_p0 = scmp.ne.s32.totalorder %s211_s0, %s83_s13  ;;  %s16_s10 = int_to_ptr.vmem [resolvable:$true] %s15_s10 }
   0x4   :  { %p87_p1 = scmp.lt.u32.totalorder %s83_s13, %s211_s0 }
   0x6   :  { %p89_p2 = pnand %p87_p1, %p84_p0 }
   0x8   :  { %92 = shalt.err (!%p89_p2)
}
   0x9   :  { %s93_s18 = scalar_lea.vmem %s16_s10, 512  ;;  %p98_p4 = scmp.lt.s32.totalorder %s16_s10, %s16_s10 }
   0xa   :  { %p94_p3 = scmp.ne.s32.totalorder %s16_s10, %s93_s18  ;;  %p99_p5 = scmp.lt.s32.totalorder %s93_s18, %s93_s18 }
   0xc   :  { %p100_p6 = por %p99_p5, %p98_p4 }
   0xe   :  { %p101_p7 = pnand %p100_p6, %p94_p3 }
  0x10   :  { %104 = shalt.err (!%p101_p7)
}
  0x11   :  { %s156_s19 = smov 128   ;;  %s157_s20 = smov 8  }
  0x12   :  { %21 = dma.hbm_to_vmem [thread:$0]  %s211_s0, 512, %s16_s10, [#allocation3], %s156_s19, %s156_s19, %s157_s20  }
  0x13   :  { %s158_s23 = smov [#allocation5]   ;;  %s105_s27 = scalar_lea.hbm %s212_s1, 512 }
  0x14   :  { %s27_s24 = sshll.u32 %s158_s23, 4  ;;  %p106_p8 = scmp.ne.s32.totalorder %s212_s1, %s105_s27  ;;  %s28_s24 = int_to_ptr.vmem [resolvable:$true] %s27_s24 }
  0x15   :  { %p109_p9 = scmp.lt.u32.totalorder %s105_s27, %s212_s1 }
  0x17   :  { %p111_p10 = pnand %p109_p9, %p106_p8 }
  0x19   :  { %114 = shalt.err (!%p111_p10)
}
  0x1a   :  { %s115_s4 = scalar_lea.vmem %s28_s24, 512  ;;  %p120_p12 = scmp.lt.s32.totalorder %s28_s24, %s28_s24 }
  0x1b   :  { %p116_p11 = scmp.ne.s32.totalorder %s28_s24, %s115_s4  ;;  %p121_p13 = scmp.lt.s32.totalorder %s115_s4, %s115_s4 }
  0x1d   :  { %p122_p0 = por %p121_p13, %p120_p12 }
  0x1f   :  { %p123_p1 = pnand %p122_p0, %p116_p11 }
  0x21   :  { %126 = shalt.err (!%p123_p1)
}
  0x22   :  { %33 = dma.hbm_to_vmem [thread:$0]  %s212_s1, 512, %s28_s24, [#allocation6], %s156_s19, %s156_s19, %s157_s20  }
  0x23   :  { %149 = dma.done.wait [#allocation3], 512  }
  0x24   :  { %150 = vsyncadd [#allocation3], 4294966784 }
  0x25   :  { %151 = dma.done.wait [#allocation6], 512  }
  0x26   :  { %152 = vsyncadd [#allocation6], 4294966784  ;;  %v40_v0 = vld [vmem:[#allocation2] sm:$0xff]  ;;  %v41_v1 = vld [vmem:[#allocation2 + $0x8] sm:$0xff]  ;;  %s159_s1 = smov [#allocation7]  }
  0x27   :  { %v42_v2 = vld [vmem:[#allocation2 + $0x10] sm:$0xff]  ;;  %v43_v3 = vld [vmem:[#allocation2 + $0x18] sm:$0xff]  ;;  %v44_v4 = vld [vmem:[#allocation5] sm:$0xff]  ;;  %s68_s6 = sshll.u32 %s159_s1, 4  ;;  %s69_s6 = int_to_ptr.vmem [resolvable:$true] %s68_s6 }
  0x28   :  { %v45_v5 = vld [vmem:[#allocation5 + $0x8] sm:$0xff]  ;;  %v46_v6 = vld [vmem:[#allocation5 + $0x10] sm:$0xff]  ;;  %v47_v7 = vld [vmem:[#allocation5 + $0x18] sm:$0xff]  ;;  %v48_v8 = vmul.f32 %v44_v4, %v40_v0  ;;  %s127_s7 = scalar_lea.vmem %s69_s6, 16  ;;  %s131_s8 = scalar_lea.vmem %s69_s6, 32 }
  0x29   :  { %v49_v9 = vmul.f32 %v45_v5, %v41_v1  ;;  %v50_v10 = vmul.f32 %v46_v6, %v42_v2  ;;  %v51_v11 = vmul.f32 %v47_v7, %v43_v3  ;;  %p128_p2 = scmp.ne.s32.totalorder %s69_s6, %s127_s7  ;;  %p132_p3 = scmp.lt.s32.totalorder %s69_s6, %s69_s6 }
  0x2a   :  { %p133_p4 = scmp.lt.s32.totalorder %s131_s8, %s127_s7 }
  0x2b   :  { %v52_v12 = vadd.f32 %v49_v9, %v48_v8 }
  0x2c   :  { %p134_p5 = por %p133_p4, %p132_p3 }
  0x2d   :  { %v53_v13 = vadd.f32 %v52_v12, %v50_v10 }
  0x2e   :  { %p135_p6 = pnand %p134_p5, %p128_p2 }
  0x2f   :  { %v54_v14 = vadd.f32 %v53_v13, %v51_v11 }
  0x31   :  { %v55_v15 = vrot.slane %v54_v14, 4 }
  0x33   :  { %v56_v16 = vadd.f32 %v55_v15, %v54_v14 }
  0x35   :  { %v57_v17 = vrot.slane %v56_v16, 2 }
  0x37   :  { %v58_v18 = vadd.f32 %v57_v17, %v56_v16 }
  0x39   :  { %v59_v19 = vrot.slane %v58_v18, 1 }
  0x3b   :  { %v60_v20 = vadd.f32 %v59_v19, %v58_v18 }
  0x3d   :  { %61 = vst [vmem:[#allocation7] sm:$0x1] %v60_v20 }
  0x3e   :  { %138 = shalt.err (!%p135_p6)
}
  0x3f   :  { %s139_s11 = scalar_lea.hbm %s213_s2, 16 }
  0x40   :  { %p140_p7 = scmp.ne.s32.totalorder %s213_s2, %s139_s11  ;;  %p143_p8 = scmp.lt.u32.totalorder %s139_s11, %s213_s2 }
  0x42   :  { %p145_p9 = pnand %p143_p8, %p140_p7 }
  0x44   :  { %148 = shalt.err (!%p145_p9)
}
  0x45   :  { %71 = dma.vmem_to_hbm [thread:$0]  %s69_s6, 16, %s213_s2, [#allocation4]  }
  0x46   :  { %153 = dma.done.wait [#allocation4], 16  }
  0x47   :  { %154 = vsyncadd [#allocation4], 4294967280 }
  0x48   :  { %75 = vsyncpa [#allocation3], 1 }
  0x49   :  { %76 = vsyncpa [#allocation6], 1 }
  0x4a   :  { %77 = vsyncpa [#allocation4], 1 }

</bundles_post_ra>
